<compile_context>
chip_gen: v5e
topology: v5e:2x2
jax: 0.10.0
libtpu: 0.0.40
codegen_flags: <defaults>
</compile_context>

<pallas_src>
import jax
import jax.numpy as jnp
from jax.experimental import pallas as pl
from jax.experimental.pallas import tpu as pltpu


def _single_layer_kernel(x_ref, w_ref, b_ref, o_ref):
    # x_ref: (TB, L)    packed activations (PACK samples per 128-lane row)
    # w_ref: (L, PACK)  block-diagonal weight, resident across the whole grid
    # b_ref: (1,)       bias scalar in SMEM
    # o_ref: (TB, PACK) packed outputs
    #
    # The MXU is otherwise idle, so it does the per-sample 32-element
    # reduction via the block-diagonal weight (one matmul per tile).
    z = jnp.dot(x_ref[...], w_ref[...], preferred_element_type=jnp.float32)
    z = z + b_ref[0]
    # Exact sigmoid with a single EUP transcendental (tanh); avoids the
    # approximate-reciprocal error and exp(-z) overflow of the prior version.
    o_ref[...] = 0.5 * jnp.tanh(0.5 * z) + 0.5


def _pick_row_tile(rows: int, cap: int) -> int:
    """Largest VMEM-safe row tile satisfying the (8, 128) block rules."""
    cap = max(8, (cap // 8) * 8)
    if rows < 8:
        return rows  # block dim == full array dim is always allowed
    return max(8, min(cap, (rows // 8) * 8))


def _pack_weight(w_vec: jax.Array, pack: int) -> jax.Array:
    """(D,) -> (pack*D, pack) block-diagonal weight: W2[j*D + d, j] = w[d]."""
    d = w_vec.shape[0]
    eye = jnp.eye(pack, dtype=w_vec.dtype)                    # (pack, pack)
    return (eye[:, None, :] * w_vec[None, :, None]).reshape(pack * d, pack)


def single_layer_net(x, weight, bias, *, tile_rows: int = 8192):
    """Forward pass of SingleLayerNet: sigmoid(x @ weight.T + bias).

    x: (B, D) float32; weight: (1, D); bias: (1,). Returns (B, 1) float32.
    `tile_rows` is the packed-row tile size (each packed row holds 128//D
    samples when D divides 128); the default is 4 MiB/buffer at D=32.
    """
    B, D = x.shape
    x = x.astype(jnp.float32)
    w = weight.reshape(-1).astype(jnp.float32)   # (D,)
    b = bias.reshape(-1).astype(jnp.float32)     # (1,)

    # Pack several samples per 128-lane row when the feature dim allows it.
    pack = 128 // D if (D <= 128 and 128 % D == 0) else 1
    lane = pack * D
    rows = B // pack
    rem = B - rows * pack

    if rows == 0:  # batch smaller than one packed row: trivial XLA fallback
        return jax.nn.sigmoid(x @ w.reshape(D, 1) + b)

    # Contiguous reshape (pure bitcast when rem == 0).  For rem != 0 only the
    # <=3 tail samples are peeled off; no pad-to-tile-multiple copy of x.
    x_bulk = x if rem == 0 else x[: rows * pack]
    x_packed = x_bulk.reshape(rows, lane)
    w_packed = _pack_weight(w, pack)             # (lane, pack)

    tb = _pick_row_tile(rows, tile_rows)
    grid = (pl.cdiv(rows, tb),)                  # ragged last block handled by Pallas

    out = pl.pallas_call(
        _single_layer_kernel,
        out_shape=jax.ShapeDtypeStruct((rows, pack), jnp.float32),
        grid_spec=pltpu.PrefetchScalarGridSpec(
            num_scalar_prefetch=0,
            grid=grid,
            in_specs=[
                pl.BlockSpec((tb, lane), lambda i: (i, 0)),          # x tile (streamed)
                pl.BlockSpec((lane, pack), lambda i: (0, 0)),        # weight (resident)
                pl.BlockSpec(memory_space=pltpu.MemorySpace.SMEM),   # bias scalar
            ],
            out_specs=pl.BlockSpec((tb, pack), lambda i: (i, 0)),
        ),
        compiler_params=pltpu.CompilerParams(
            dimension_semantics=("parallel",),   # v7x: shard batch tiles over both TCs
        ),
        cost_estimate=pl.CostEstimate(
            flops=2 * rows * lane * pack,
            transcendentals=rows * pack,
            bytes_accessed=(rows * lane + rows * pack + lane * pack + 1) * 4,
        ),
    )(x_packed, w_packed, b)

    out = out.reshape(rows * pack, 1)            # contiguous, free
    if rem:
        tail = jax.nn.sigmoid(x[rows * pack:] @ w.reshape(D, 1) + b)
        out = jnp.concatenate([out, tail], axis=0)
    return out


def _reference(x, weight, bias):
    return jax.nn.sigmoid(x @ weight.T + bias)


if __name__ == "__main__":
    key = jax.random.PRNGKey(0)
    k_w, k_b = jax.random.split(key)

    input_size = 32  # matches nn.Linear(input_size, 1)

    # Params mimic PyTorch nn.Linear init (uniform +-1/sqrt(fan_in)).  Test
    # data is rounded to bf16-representable values so the comparison isolates
    # kernel math from MXU input-rounding of f32 matmul operands.
    def _bf16_exact(a):
        return a.astype(jnp.bfloat16).astype(jnp.float32)

    bound = 1.0 / jnp.sqrt(jnp.float32(input_size))
    weight = _bf16_exact(jax.random.uniform(
        k_w, (1, input_size), jnp.float32, minval=-bound, maxval=bound))
    bias = _bf16_exact(jax.random.uniform(
        k_b, (1,), jnp.float32, minval=-bound, maxval=bound))

    def _check(batch, **kw):
        kx = jax.random.fold_in(key, batch)
        x = _bf16_exact(jax.random.normal(kx, (batch, input_size), jnp.float32))
        out = jax.block_until_ready(single_layer_net(x, weight, bias, **kw))
        ref = _reference(x, weight, bias)
        assert out.shape == (batch, 1), out.shape
        err = float(jnp.max(jnp.abs(out - ref)))
        assert err < 1e-4, f"batch={batch} max_abs_err={err}"

    _check(64)                   # single tile, exact packing
    _check(37)                   # ragged grid block + mod-4 tail samples
    _check(2600, tile_rows=64)   # multi-tile pipeline + ragged final tile

    print("KERNEL_OK")
</pallas_src>

<mosaic_0001>
module attributes {stable_mosaic.version = 11 : i64} {
  func.func @_single_layer_kernel(%arg0: i32, %arg1: memref<16x128xf32, #tpu.memory_space<vmem>>, %arg2: memref<128x4xf32, #tpu.memory_space<vmem>>, %arg3: memref<1xf32, #tpu.memory_space<smem>>, %arg4: memref<16x4xf32, #tpu.memory_space<vmem>>) attributes {dimension_semantics = [#tpu.dimension_semantics<parallel>], iteration_bounds = array<i64: 1>, scalar_prefetch = 0 : i64, scratch_operands = 0 : i64, tpu.core_type = #tpu.core_type<tc>, window_params = [{transform_indices = @transform_0, window_bounds = array<i64: 16, 128>}, {pipeline_mode = #tpu.pipeline_mode<synchronous>, transform_indices = @transform_1, window_bounds = array<i64: 128, 4>}, {transform_indices = @transform_2, window_bounds = array<i64: 1>}, {transform_indices = @transform_3, window_bounds = array<i64: 16, 4>}]} {
    %c0 = arith.constant 0 : index
    %c0_0 = arith.constant 0 : index
    %0 = vector.load %arg1[%c0, %c0_0] : memref<16x128xf32, #tpu.memory_space<vmem>>, vector<16x128xf32>
    %c0_1 = arith.constant 0 : index
    %c0_2 = arith.constant 0 : index
    %1 = vector.load %arg2[%c0_1, %c0_2] : memref<128x4xf32, #tpu.memory_space<vmem>>, vector<128x4xf32>
    %cst = arith.constant dense<0.000000e+00> : vector<16x4xf32>
    %2 = tpu.matmul %0, %1, %cst {dimension_numbers = #tpu.dot_dimension_numbers<[1], [0], [0], [1], [0, 0, 1, 1], [], []>} : vector<16x128xf32>, vector<128x4xf32>, vector<16x4xf32> -> vector<16x4xf32>
    %c0_3 = arith.constant 0 : index
    %3 = memref.load %arg3[%c0_3] : memref<1xf32, #tpu.memory_space<smem>>
    %4 = vector.broadcast %3 : f32 to vector<16x4xf32>
    %5 = arith.addf %2, %4 : vector<16x4xf32>
    %cst_4 = arith.constant 5.000000e-01 : f32
    %6 = vector.broadcast %cst_4 : f32 to vector<16x4xf32>
    %7 = arith.mulf %6, %5 : vector<16x4xf32>
    %8 = math.tanh %7 : vector<16x4xf32>
    %cst_5 = arith.constant 5.000000e-01 : f32
    %9 = vector.broadcast %cst_5 : f32 to vector<16x4xf32>
    %10 = arith.mulf %9, %8 : vector<16x4xf32>
    %cst_6 = arith.constant 5.000000e-01 : f32
    %11 = vector.broadcast %cst_6 : f32 to vector<16x4xf32>
    %12 = arith.addf %10, %11 : vector<16x4xf32>
    %c0_7 = arith.constant 0 : index
    %c0_8 = arith.constant 0 : index
    %13 = vector.load %arg4[%c0_7, %c0_8] : memref<16x4xf32, #tpu.memory_space<vmem>>, vector<16x4xf32>
    tpu.vector_store %arg4[%c0_7, %c0_8], %12 {strides = array<i32>} : memref<16x4xf32, #tpu.memory_space<vmem>>, vector<16x4xf32>,
    return
  }
  func.func @transform_0(%arg0: i32) -> (i32, i32) {
    %c0_i32 = arith.constant 0 : i32
    %c0_i32_0 = arith.constant 0 : i32
    return %arg0, %c0_i32 : i32, i32
  }
  func.func @transform_1(%arg0: i32) -> (i32, i32) {
    %c0_i32 = arith.constant 0 : i32
    %c0_i32_0 = arith.constant 0 : i32
    %c0_i32_1 = arith.constant 0 : i32
    return %c0_i32, %c0_i32_0 : i32, i32
  }
  func.func @transform_2(%arg0: i32) -> i32 {
    %c0_i32 = arith.constant 0 : i32
    %c0_i32_0 = arith.constant 0 : i32
    return %c0_i32 : i32
  }
  func.func @transform_3(%arg0: i32) -> (i32, i32) {
    %c0_i32 = arith.constant 0 : i32
    %c0_i32_0 = arith.constant 0 : i32
    return %arg0, %c0_i32 : i32, i32
  }
}

</mosaic_0001>

<bundles_post_ra>
// kernel: tpu_custom_call.1
= control target key start
LH: loop header
LB: loop body
LE: loop exit
PB: predicated region body
PF: predicated region fallthrough
CT: control target
= control target key end

     0   :  { %vm66_vm0 = vcmask 31744   ;;  %s176_s1 = inlined_call_operand.vmem [shape: f32[128,4], index: 1, kind: input, shape index: {}]   ;;  %s177_s0 = inlined_call_operand.vmem [shape: f32[16,128], index: 0, kind: input, shape index: {}]   ;;  %s178_s2 = inlined_call_operand.<no memory space> [shape: f32[1], index: 2, kind: input, shape index: {}]   ;;  %s179_s3 = inlined_call_operand.vmem [shape: f32[16,4], index: 3, kind: output, shape index: {}]  }
   0x1   :  { %v32_v0 = vld [vmem:[%s176_s1 + $0x78] sm:$0xff]  ;;  %v31_v1 = vld [vmem:[%s176_s1 + $0x70] sm:$0xff]  ;;  %v30_v2 = vld [vmem:[%s176_s1 + $0x68] sm:$0xff]  ;;  %v34_v18 = vstv %s178_s2 }
   0x2   :  { %35 = vmatpush.msra.mxu0 %v32_v0  ;;  %73 = vmatpush.msra.mxu1 %v32_v0  ;;  %v29_v3 = vld [vmem:[%s176_s1 + $0x60] sm:$0xff]  ;;  %v28_v4 = vld [vmem:[%s176_s1 + $0x58] sm:$0xff]  ;;  %v27_v5 = vld [vmem:[%s176_s1 + $0x50] sm:$0xff] }
   0x3   :  { %v26_v6 = vld [vmem:[%s176_s1 + $0x48] sm:$0xff]  ;;  %v25_v7 = vld [vmem:[%s176_s1 + $0x40] sm:$0xff]  ;;  %v24_v8 = vld [vmem:[%s176_s1 + $0x38] sm:$0xff] }
   0x4   :  { %36 = vmatpush.msra.mxu0 %v31_v1  ;;  %74 = vmatpush.msra.mxu1 %v31_v1  ;;  %v23_v9 = vld [vmem:[%s176_s1 + $0x30] sm:$0xff]  ;;  %v22_v10 = vld [vmem:[%s176_s1 + $0x28] sm:$0xff]  ;;  %v21_v11 = vld [vmem:[%s176_s1 + $0x20] sm:$0xff] }
   0x5   :  { %v20_v12 = vld [vmem:[%s176_s1 + $0x18] sm:$0xff]  ;;  %v19_v13 = vld [vmem:[%s176_s1 + $0x10] sm:$0xff]  ;;  %v18_v14 = vld [vmem:[%s176_s1 + $0x8] sm:$0xff] }
   0x6   :  { %37 = vmatpush.msra.mxu0 %v30_v2  ;;  %75 = vmatpush.msra.mxu1 %v30_v2  ;;  %v17_v15 = vld [vmem:[%s176_s1] sm:$0xff]  ;;  %v16_v17 = vld [vmem:[%s177_s0 + $0x8] sm:$0xff] }
   0x7   :  { %v15_v16 = vld [vmem:[%s177_s0] sm:$0xff] }
   0x8   :  { %38 = vmatpush.msra.mxu0 %v29_v3  ;;  %76 = vmatpush.msra.mxu1 %v29_v3 }
   0xa   :  { %39 = vmatpush.msra.mxu0 %v28_v4  ;;  %77 = vmatpush.msra.mxu1 %v28_v4 }
   0xc   :  { %40 = vmatpush.msra.mxu0 %v27_v5  ;;  %78 = vmatpush.msra.mxu1 %v27_v5 }
   0xe   :  { %41 = vmatpush.msra.mxu0 %v26_v6  ;;  %79 = vmatpush.msra.mxu1 %v26_v6 }
  0x10   :  { %42 = vmatpush.msra.mxu0 %v25_v7  ;;  %80 = vmatpush.msra.mxu1 %v25_v7 }
  0x12   :  { %43 = vmatpush.msra.mxu0 %v24_v8  ;;  %81 = vmatpush.msra.mxu1 %v24_v8 }
  0x14   :  { %44 = vmatpush.msra.mxu0 %v23_v9  ;;  %82 = vmatpush.msra.mxu1 %v23_v9 }
  0x16   :  { %45 = vmatpush.msra.mxu0 %v22_v10  ;;  %83 = vmatpush.msra.mxu1 %v22_v10 }
  0x18   :  { %46 = vmatpush.msra.mxu0 %v21_v11  ;;  %84 = vmatpush.msra.mxu1 %v21_v11 }
  0x1a   :  { %47 = vmatpush.msra.mxu0 %v20_v12  ;;  %85 = vmatpush.msra.mxu1 %v20_v12 }
  0x1c   :  { %48 = vmatpush.msra.mxu0 %v19_v13  ;;  %86 = vmatpush.msra.mxu1 %v19_v13 }
  0x1e   :  { %49 = vmatpush.msra.mxu0 %v18_v14  ;;  %87 = vmatpush.msra.mxu1 %v18_v14 }
  0x20   :  { %50 = vmatpush.msra.mxu0 %v17_v15  ;;  %88 = vmatpush.msra.mxu1 %v17_v15 }
  0x21   :  { %51 = vmatmul.f32.vlgmr.msra.gmra.mxu0 %v15_v16  ;;  %54 = vmatmul.f32.vlgmr.msra.gmra.mxu1 %v16_v17 }
  0x9e   :  { %v52_v19 = vpop.f32.mrf.mxu0  ;;  %v55_v20 = vpop.f32.mrf.mxu1 }
  0x9f   :  { %v53_v21 = vadd.f32 %v52_v19, %v34_v18  ;;  %v56_v22 = vadd.f32 %v55_v20, %v34_v18 }
  0xa1   :  { %v58_v23 = vmul.f32 0.5, %v53_v21  ;;  %v59_v24 = vmul.f32 0.5, %v56_v22 }
  0xa3   :  { %89 = vtanh.f32 %v58_v23 }
  0xa4   :  { %91 = vtanh.f32 %v59_v24 }
  0xa9   :  { %v90_v25 = vpop.eup %89 }
  0xaa   :  { %v92_v26 = vpop.eup %91  ;;  %v62_v27 = vmul.f32 0.5, %v90_v25 }
  0xab   :  { %v63_v28 = vmul.f32 0.5, %v92_v26 }
  0xac   :  { %v64_v29 = vadd.f32 0.5, %v62_v27 }
  0xad   :  { %v65_v30 = vadd.f32 0.5, %v63_v28 }
  0xae   :  { %67 = vst.msk [vmem:[%s179_s3] sm:$0xff] %vm66_vm0, %v64_v29 }
  0xaf   :  { %68 = vst.msk [vmem:[%s179_s3 + $0x8] sm:$0xff] %vm66_vm0, %v65_v30 }

</bundles_post_ra>
